<compile_context>
chip_gen: v6e
topology: v6e:2x2x1
jax: 0.10.0
libtpu: 0.0.40
codegen_flags: <defaults>
</compile_context>

<pallas_src>
import functools
import math

import jax
import jax.numpy as jnp
from jax.experimental import pallas as pl
from jax.experimental.pallas import tpu as pltpu

LN_EPS = 1e-5  # torch.nn.LayerNorm default


def _round_up(x, m):
    return (x + m - 1) // m * m


def _layer_norm(x, w, b):
    mean = jnp.mean(x, axis=-1, keepdims=True)
    var = jnp.mean((x - mean) ** 2, axis=-1, keepdims=True)
    return (x - mean) * jax.lax.rsqrt(var + LN_EPS) * w + b


# --------------------------------------------------------------------------
# Linear kernel:  (rows, Din) @ (Din, Dout) + (1, Dout), row-tiled
# --------------------------------------------------------------------------
def linear_kernel(x_ref, w_ref, b_ref, o_ref):
    acc = jnp.dot(x_ref[...].astype(w_ref.dtype), w_ref[...],
                  preferred_element_type=jnp.float32) + b_ref[...]
    o_ref[...] = acc.astype(o_ref.dtype)


def linear_call(x, w, b, *, out_dtype=jnp.float32, row_tile=512):
    # row_tile: 512 default; sweep 1024 on v6e (128 MiB VMEM), keep 512 on v7x.
    lead, din = x.shape[:-1], x.shape[-1]
    dout = w.shape[-1]
    rows = math.prod(lead)
    x2 = x.reshape(rows, din)
    tm = min(row_tile, _round_up(rows, 8))
    rows_p = _round_up(rows, tm)
    if rows_p != rows:
        x2 = jnp.pad(x2, ((0, rows_p - rows), (0, 0)))
    out = pl.pallas_call(
        linear_kernel,
        out_shape=jax.ShapeDtypeStruct((rows_p, dout), out_dtype),
        grid=(rows_p // tm,),
        in_specs=[
            pl.BlockSpec((tm, din), lambda i: (i, 0)),
            pl.BlockSpec((din, dout), lambda i: (0, 0)),
            pl.BlockSpec((1, dout), lambda i: (0, 0)),
        ],
        out_specs=pl.BlockSpec((tm, dout), lambda i: (i, 0)),
        compiler_params=pltpu.CompilerParams(dimension_semantics=("parallel",)),
    )(x2, w, b)
    return out[:rows].reshape(*lead, dout)


# --------------------------------------------------------------------------
# Fused, stage-masked, batch-tiled stack of cross-attention blocks.
# Grid = (batch_tile, layer); layer axis is the carry ("arbitrary"),
# query tokens live in the output VMEM block across layers.
# --------------------------------------------------------------------------
def resblock_stack_kernel(n_head, q0_ref, kv_ref, mask_ref,
                          lnw_ref, wq_ref, bq_ref, wkv_ref, bkv_ref,
                          wo_ref, bo_ref, wfc_ref, bfc_ref, wpr_ref, bpr_ref,
                          out_ref):
    @pl.when(pl.program_id(1) == 0)
    def _():
        out_ref[...] = q0_ref[...]

    Bt, NQ, H = out_ref.shape
    NK = kv_ref.shape[1]
    nh = n_head
    hd = H // nh
    cdt = wq_ref.dtype                          # bf16 MXU operand dtype

    x = out_ref[...]                            # (Bt, NQ, H) f32 carry
    kv = kv_ref[...].astype(jnp.float32)        # (Bt, NK, H)

    lnw = lnw_ref[0]                            # (6, H)
    ln1_w, ln1_b = lnw[0:1], lnw[1:2]
    lnkv_w, lnkv_b = lnw[2:3], lnw[3:4]
    ln2_w, ln2_b = lnw[4:5], lnw[5:6]

    # ---- pre-LN then flat full-width projections on (rows, H) -------------
    qn_r = _layer_norm(x, ln1_w, ln1_b).reshape(Bt * NQ, H).astype(cdt)
    kn_r = _layer_norm(kv, lnkv_w, lnkv_b).reshape(Bt * NK, H).astype(cdt)

    # 1/sqrt(hd) is folded into wq/bq outside the kernel.
    q_r = jnp.dot(qn_r, wq_ref[0], preferred_element_type=jnp.float32) + bq_ref[0]
    kv_r = jnp.dot(kn_r, wkv_ref[0], preferred_element_type=jnp.float32) + bkv_ref[0]

    q3 = q_r.astype(cdt).reshape(Bt, NQ, H)
    k3 = kv_r[:, :H].astype(cdt).reshape(Bt, NK, H)
    v3 = kv_r[:, H:].astype(cdt).reshape(Bt, NK, H)

    mask = mask_ref[...]                        # (NQ, NK) additive stage mask

    # ---- attention: per-head score/softmax/PV, batched over the batch tile.
    # Head split is a cheap lane slice; unrolling heads keeps only one
    # (Bt, NQ, NK) f32 score tensor live at a time (VMEM friendly).
    head_out = []
    for h in range(nh):
        sl = slice(h * hd, (h + 1) * hd)
        s = jnp.einsum("bqd,bkd->bqk", q3[:, :, sl], k3[:, :, sl],
                       preferred_element_type=jnp.float32) + mask
        s = s - jnp.max(s, axis=-1, keepdims=True)
        p = jnp.exp(s)
        p = p * pl.reciprocal(jnp.sum(p, axis=-1, keepdims=True), approx=True)
        head_out.append(
            jnp.einsum("bqk,bkd->bqd", p.astype(cdt), v3[:, :, sl],
                       preferred_element_type=jnp.float32))          # (Bt,NQ,hd)

    # concat(heads) along lanes -> one flat (rows, H) @ (H, H) out-projection
    o_r = jnp.concatenate(head_out, axis=-1).reshape(Bt * NQ, H).astype(cdt)
    attn = jnp.dot(o_r, wo_ref[0], preferred_element_type=jnp.float32) + bo_ref[0]

    x_r = x.reshape(Bt * NQ, H) + attn          # residual 1 (f32)

    # ---- MLP (exact GELU), bf16 matmul operands / f32 accumulation ---------
    xn_r = _layer_norm(x_r, ln2_w, ln2_b).astype(cdt)
    h1 = jnp.dot(xn_r, wfc_ref[0], preferred_element_type=jnp.float32) + bfc_ref[0]
    h1 = jax.nn.gelu(h1, approximate=False)
    mlp = jnp.dot(h1.astype(cdt), wpr_ref[0], preferred_element_type=jnp.float32) + bpr_ref[0]

    out_ref[...] = (x_r + mlp).reshape(Bt, NQ, H)   # residual 2, lane-dense store


def resblock_stack_call(q0, kv, mask, stack, n_head, *, batch_tile=8):
    B, NQ, H = q0.shape
    NK = kv.shape[1]
    num_layers = stack["lnw"].shape[0]
    mlp_width = stack["wfc"].shape[-1]

    Bt = max(1, min(batch_tile, B))
    Bp = _round_up(B, Bt)
    if Bp != B:
        q0 = jnp.pad(q0, ((0, Bp - B), (0, 0), (0, 0)))
        kv = jnp.pad(kv, ((0, Bp - B), (0, 0), (0, 0)))

    w_names = ("lnw", "wq", "bq", "wkv", "bkv", "wo", "bo", "wfc", "bfc", "wpr", "bpr")
    w_arrays = [stack[n] for n in w_names]

    def w_spec(arr):
        nd = arr.ndim
        return pl.BlockSpec((1,) + arr.shape[1:],
                            lambda b, l, _nd=nd: (l,) + (0,) * (_nd - 1))

    per_layer_w_bytes = sum(math.prod(a.shape[1:]) * a.dtype.itemsize for a in w_arrays)
    block_bytes = (Bt * NQ * H * 4                      # q0 block (f32)
                   + Bt * NK * H * kv.dtype.itemsize    # kv block (bf16)
                   + NQ * NK * 4                        # stage mask
                   + Bt * NQ * H * 4                    # output carry block
                   + per_layer_w_bytes)
    # double-buffered blocks + margin for in-kernel intermediates
    vmem_limit = int(min(max(2 * block_bytes + (8 << 20), 32 << 20), 100 << 20))
    # TODO(synk): at production widths on v7x (64 MiB VMEM), additionally tile
    # wfc/wpr along mlp_width (inner grid axis) and use pltpu.CORE_PARALLEL on
    # the batch-tile axis to engage the second TensorCore.

    flops = Bp * num_layers * (2 * NQ * H * H            # Q projection
                               + 4 * NK * H * H          # fused K/V projection
                               + 4 * NQ * NK * H         # scores + P@V
                               + 2 * NQ * H * H          # out projection
                               + 4 * NQ * H * mlp_width)  # MLP
    cost = pl.CostEstimate(
        flops=int(flops),
        transcendentals=int(Bp * num_layers * (n_head * NQ * NK + NQ * mlp_width)),
        bytes_accessed=int((Bp // Bt) * num_layers * per_layer_w_bytes
                           + Bp * NQ * H * 8 + Bp * NK * H * kv.dtype.itemsize),
    )

    out = pl.pallas_call(
        functools.partial(resblock_stack_kernel, n_head),
        out_shape=jax.ShapeDtypeStruct((Bp, NQ, H), jnp.float32),
        grid=(Bp // Bt, num_layers),
        in_specs=[pl.BlockSpec((Bt, NQ, H), lambda b, l: (b, 0, 0)),
                  pl.BlockSpec((Bt, NK, H), lambda b, l: (b, 0, 0)),
                  pl.BlockSpec((NQ, NK), lambda b, l: (0, 0))]
                 + [w_spec(a) for a in w_arrays],
        out_specs=pl.BlockSpec((Bt, NQ, H), lambda b, l: (b, 0, 0)),
        compiler_params=pltpu.CompilerParams(
            dimension_semantics=("parallel", "arbitrary"),
            vmem_limit_bytes=vmem_limit),
        cost_estimate=cost,
    )(q0, kv, mask, *w_arrays)
    return out[:B]


# --------------------------------------------------------------------------
# AttnPooler forward (glue in plain JAX, compute in the kernels above)
# --------------------------------------------------------------------------
def build_stage_mask(stage_num, split_part):
    """Additive mask: query of stage i may only attend to kv tokens of stage i."""
    q_seg = jnp.concatenate(
        [jnp.full((n,), i, jnp.int32) for i, n in enumerate(stage_num)])
    kv_seg = jnp.concatenate(
        [jnp.full((n + m,), i, jnp.int32)
         for i, (n, m) in enumerate(zip(stage_num, split_part))])
    return jnp.where(q_seg[:, None] == kv_seg[None, :], 0.0, -1e30).astype(jnp.float32)


def attn_pooler_forward(image_embs, prep, stage_num, split_part, n_head, *,
                        batch_tile=8):
    if isinstance(stage_num, int):
        stage_num = [prep["query"].shape[1] // stage_num] * len(split_part)

    if prep["in_proj_w"] is not None:
        x = linear_call(image_embs, prep["in_proj_w"], prep["in_proj_b"],
                        out_dtype=jnp.bfloat16)                     # (B, L, H)
    else:
        x = image_embs.astype(jnp.bfloat16)
    B = x.shape[0]

    query = prep["query"]                                           # (1, NQ, H)
    q0 = jnp.broadcast_to(query, (B,) + query.shape[1:])            # f32 carry init
    q_bf = jnp.broadcast_to(query.astype(jnp.bfloat16), (B,) + query.shape[1:])

    # fused K/V for all stages: [stage_i queries ; stage_i image tokens] ...
    kv_parts = []
    qs = xs = 0
    for nq_s, nx_s in zip(stage_num, split_part):
        kv_parts.append(q_bf[:, qs:qs + nq_s, :])
        kv_parts.append(x[:, xs:xs + nx_s, :])
        qs += nq_s
        xs += nx_s
    kv = jnp.concatenate(kv_parts, axis=1)                          # (B, NK, H)

    mask = build_stage_mask(stage_num, split_part)                  # (NQ, NK)

    tokens = resblock_stack_call(q0, kv, mask, prep["stack"], n_head,
                                 batch_tile=batch_tile)             # (B, NQ, H)
    return linear_call(tokens, prep["out_proj_w"], prep["out_proj_b"])


# --------------------------------------------------------------------------
# Parameter init (torch-like f32 layout) + one-time packing for the kernels
# --------------------------------------------------------------------------
def init_params(key, *, num_query, num_layers, n_head,
                enc_hidden, hidden, output_size, mlp_ratio=4):
    mlp_width = int(hidden * mlp_ratio)
    keys = iter(jax.random.split(key, 8 + 20 * num_layers))

    def nrm(shape, std):
        return std * jax.random.normal(next(keys), shape, jnp.float32)

    params = {
        "query": nrm((1, num_query, hidden), 0.02),
        "in_proj_w": nrm((enc_hidden, hidden), 0.1),
        "in_proj_b": nrm((1, hidden), 0.02),
        "out_proj_w": nrm((hidden, output_size), 0.1),
        "out_proj_b": nrm((1, output_size), 0.02),
        "layers": [],
    }
    for _ in range(num_layers):
        params["layers"].append({
            "ln1_w": 1.0 + nrm((1, hidden), 0.02),
            "ln1_b": nrm((1, hidden), 0.02),
            "lnkv_w": 1.0 + nrm((1, hidden), 0.02),
            "lnkv_b": nrm((1, hidden), 0.02),
            "wq": nrm((hidden, hidden), 0.1), "wk": nrm((hidden, hidden), 0.1),
            "wv": nrm((hidden, hidden), 0.1),
            "bq": nrm((1, hidden), 0.02),
            "bk": nrm((1, hidden), 0.02),
            "bv": nrm((1, hidden), 0.02),
            "wo": nrm((hidden, hidden), 0.1),
            "bo": nrm((1, hidden), 0.02),
            "ln2_w": 1.0 + nrm((1, hidden), 0.02),
            "ln2_b": nrm((1, hidden), 0.02),
            "wfc": nrm((hidden, mlp_width), 0.1),
            "bfc": nrm((1, mlp_width), 0.02),
            "wpr": nrm((mlp_width, hidden), 0.1),
            "bpr": nrm((1, hidden), 0.02),
        })
    return params


def prepare_params(raw, n_head):
    """One-time packing: stack layers, fuse K/V projections column-wise, bf16
    matmul weights, 1/sqrt(head_dim) folded into the Q projection."""
    layers = raw["layers"]
    H = layers[0]["wq"].shape[0]
    hd = H // n_head
    scale = 1.0 / math.sqrt(hd)

    stack = {
        "lnw": jnp.stack([jnp.concatenate(
            [l["ln1_w"], l["ln1_b"], l["lnkv_w"], l["lnkv_b"],
             l["ln2_w"], l["ln2_b"]], axis=0) for l in layers]),
        "wq": jnp.stack([l["wq"] * scale for l in layers]).astype(jnp.bfloat16),
        "bq": jnp.stack([l["bq"] * scale for l in layers]),
        "wkv": jnp.stack([jnp.concatenate([l["wk"], l["wv"]], axis=-1)
                          for l in layers]).astype(jnp.bfloat16),
        "bkv": jnp.stack([jnp.concatenate([l["bk"], l["bv"]], axis=-1)
                          for l in layers]),
        "wo": jnp.stack([l["wo"] for l in layers]).astype(jnp.bfloat16),
        "bo": jnp.stack([l["bo"] for l in layers]),
        "wfc": jnp.stack([l["wfc"] for l in layers]).astype(jnp.bfloat16),
        "bfc": jnp.stack([l["bfc"] for l in layers]),
        "wpr": jnp.stack([l["wpr"] for l in layers]).astype(jnp.bfloat16),
        "bpr": jnp.stack([l["bpr"] for l in layers]),
    }
    return {
        "query": raw["query"],
        "in_proj_w": raw["in_proj_w"].astype(jnp.bfloat16),
        "in_proj_b": raw["in_proj_b"],
        "out_proj_w": raw["out_proj_w"].astype(jnp.bfloat16),
        "out_proj_b": raw["out_proj_b"],
        "stack": stack,
    }


# --------------------------------------------------------------------------
# Pure-JAX f32 reference (mirrors the torch module, per-stage loop, dense softmax)
# --------------------------------------------------------------------------
def attn_pooler_reference(image_embs, raw, stage_num, split_part, n_head):
    def ln(x, w, b):
        m = jnp.mean(x, axis=-1, keepdims=True)
        v = jnp.mean((x - m) ** 2, axis=-1, keepdims=True)
        return (x - m) * jax.lax.rsqrt(v + LN_EPS) * w + b

    x = image_embs @ raw["in_proj_w"] + raw["in_proj_b"]
    B = x.shape[0]
    query = jnp.broadcast_to(raw["query"], (B,) + raw["query"].shape[1:])
    H = query.shape[-1]
    hd = H // n_head
    scale = 1.0 / math.sqrt(hd)

    def split_heads(t):
        b, n, _ = t.shape
        return t.reshape(b, n, n_head, hd).transpose(0, 2, 1, 3)

    outs = []
    qs = xs = 0
    for nq_s, nx_s in zip(stage_num, split_part):
        tok = query[:, qs:qs + nq_s]
        img = x[:, xs:xs + nx_s]
        qs += nq_s
        xs += nx_s
        kv = jnp.concatenate([tok, img], axis=1)
        for l in raw["layers"]:
            qn = ln(tok, l["ln1_w"], l["ln1_b"])
            kn = ln(kv, l["lnkv_w"], l["lnkv_b"])
            Q = split_heads(qn @ l["wq"] + l["bq"])
            K = split_heads(kn @ l["wk"] + l["bk"])
            V = split_heads(kn @ l["wv"] + l["bv"])
            s = jnp.einsum("bhqd,bhkd->bhqk", Q, K) * scale
            p = jax.nn.softmax(s, axis=-1)
            o = jnp.einsum("bhqk,bhkd->bhqd", p, V)
            o = o.transpose(0, 2, 1, 3).reshape(tok.shape[0], tok.shape[1], H)
            tok = tok + (o @ l["wo"] + l["bo"])
            h1 = jax.nn.gelu(ln(tok, l["ln2_w"], l["ln2_b"]) @ l["wfc"] + l["bfc"],
                             approximate=False)
            tok = tok + (h1 @ l["wpr"] + l["bpr"])
        outs.append(tok)
    tokens = jnp.concatenate(outs, axis=1)
    return tokens @ raw["out_proj_w"] + raw["out_proj_b"]


if __name__ == "__main__":
    B = 2
    enc_hidden = 48      # encoder_hidden_size != hidden_size -> in_proj active
    hidden = 32
    n_head = 4
    num_layers = 2
    output_size = 16
    stage_num = [4, 2, 2]
    split_part = [8, 8, 8]
    num_query = sum(stage_num)   # 8
    L = sum(split_part)          # 24

    key = jax.random.PRNGKey(0)
    kp, kx = jax.random.split(key)
    raw = init_params(kp, num_query=num_query, num_layers=num_layers,
                      n_head=n_head, enc_hidden=enc_hidden, hidden=hidden,
                      output_size=output_size)
    prep = prepare_params(raw, n_head)
    image_embs = jax.random.normal(kx, (B, L, enc_hidden), jnp.float32)

    out = attn_pooler_forward(image_embs, prep, stage_num, split_part, n_head,
                              batch_tile=2)
    out = jax.block_until_ready(out)
    assert out.shape == (B, num_query, output_size), out.shape
    assert bool(jnp.all(jnp.isfinite(out)))

    # correctness vs a pure-f32 reference (tolerance covers bf16 weights/acts
    # and the approx softmax reciprocal)
    ref = attn_pooler_reference(image_embs, raw, stage_num, split_part, n_head)
    err = float(jnp.max(jnp.abs(out - ref.astype(out.dtype))))
    assert err < 5e-2, f"max |kernel - reference| = {err}"

    print("KERNEL_OK")
</pallas_src>

<mosaic_0001>
module attributes {stable_mosaic.version = 11 : i64} {
  func.func @linear_kernel(%arg0: i32, %arg1: memref<48x48xf32, #tpu.memory_space<vmem>>, %arg2: memref<48x32xbf16, #tpu.memory_space<vmem>>, %arg3: memref<1x32xf32, #tpu.memory_space<vmem>>, %arg4: memref<48x32xbf16, #tpu.memory_space<vmem>>) attributes {dimension_semantics = [#tpu.dimension_semantics<parallel>], iteration_bounds = array<i64: 1>, scalar_prefetch = 0 : i64, scratch_operands = 0 : i64, tpu.core_type = #tpu.core_type<tc>, window_params = [{transform_indices = @transform_0, window_bounds = array<i64: 48, 48>}, {pipeline_mode = #tpu.pipeline_mode<synchronous>, transform_indices = @transform_1, window_bounds = array<i64: 48, 32>}, {pipeline_mode = #tpu.pipeline_mode<synchronous>, transform_indices = @transform_2, window_bounds = array<i64: 1, 32>}, {transform_indices = @transform_3, window_bounds = array<i64: 48, 32>}]} {
    %c0 = arith.constant 0 : index
    %c0_0 = arith.constant 0 : index
    %0 = vector.load %arg1[%c0, %c0_0] : memref<48x48xf32, #tpu.memory_space<vmem>>, vector<48x48xf32>
    %1 = arith.truncf %0 : vector<48x48xf32> to vector<48x48xbf16>
    %c0_1 = arith.constant 0 : index
    %c0_2 = arith.constant 0 : index
    %2 = vector.load %arg2[%c0_1, %c0_2] : memref<48x32xbf16, #tpu.memory_space<vmem>>, vector<48x32xbf16>
    %cst = arith.constant dense<0.000000e+00> : vector<48x32xf32>
    %3 = tpu.matmul %1, %2, %cst {dimension_numbers = #tpu.dot_dimension_numbers<[1], [0], [0], [1], [0, 0, 1, 1], [], []>} : vector<48x48xbf16>, vector<48x32xbf16>, vector<48x32xf32> -> vector<48x32xf32>
    %c0_3 = arith.constant 0 : index
    %c0_4 = arith.constant 0 : index
    %4 = vector.load %arg3[%c0_3, %c0_4] : memref<1x32xf32, #tpu.memory_space<vmem>>, vector<1x32xf32>
    %5 = vector.broadcast %4 : vector<1x32xf32> to vector<48x32xf32>
    %6 = arith.addf %3, %5 : vector<48x32xf32>
    %7 = arith.truncf %6 : vector<48x32xf32> to vector<48x32xbf16>
    %c0_5 = arith.constant 0 : index
    %c0_6 = arith.constant 0 : index
    %8 = vector.load %arg4[%c0_5, %c0_6] : memref<48x32xbf16, #tpu.memory_space<vmem>>, vector<48x32xbf16>
    tpu.vector_store %arg4[%c0_5, %c0_6], %7 {strides = array<i32>} : memref<48x32xbf16, #tpu.memory_space<vmem>>, vector<48x32xbf16>,
    return
  }
  func.func @transform_0(%arg0: i32) -> (i32, i32) {
    %c0_i32 = arith.constant 0 : i32
    %c0_i32_0 = arith.constant 0 : i32
    return %arg0, %c0_i32 : i32, i32
  }
  func.func @transform_1(%arg0: i32) -> (i32, i32) {
    %c0_i32 = arith.constant 0 : i32
    %c0_i32_0 = arith.constant 0 : i32
    %c0_i32_1 = arith.constant 0 : i32
    return %c0_i32, %c0_i32_0 : i32, i32
  }
  func.func @transform_2(%arg0: i32) -> (i32, i32) {
    %c0_i32 = arith.constant 0 : i32
    %c0_i32_0 = arith.constant 0 : i32
    %c0_i32_1 = arith.constant 0 : i32
    return %c0_i32, %c0_i32_0 : i32, i32
  }
  func.func @transform_3(%arg0: i32) -> (i32, i32) {
    %c0_i32 = arith.constant 0 : i32
    %c0_i32_0 = arith.constant 0 : i32
    return %arg0, %c0_i32 : i32, i32
  }
}

</mosaic_0001>

<bundles_post_ra>
// kernel: tpu_custom_call.1
= control target key start
LH: loop header
LB: loop body
LE: loop exit
PB: predicated region body
PF: predicated region fallthrough
CT: control target
= control target key end

     0   :  { %8 = vsyncpa [#allocation3], 0  ;;  %s251_s12 = smov [#allocation2]   ;;  %s318_s0 = inlined_call_operand.hbm [shape: f32[48,48], index: 0, kind: input, shape index: {}]   ;;  %s319_s1 = inlined_call_operand.vmem [shape: bf16[48,32], index: 1, kind: input, shape index: {}]   ;;  %s320_s2 = inlined_call_operand.vmem [shape: f32[1,32], index: 2, kind: input, shape index: {}]   ;;  %s321_s3 = inlined_call_operand.vmem [shape: bf16[48,32], index: 3, kind: output, shape index: {}]  }
   0x1   :  { %s14_s13 = sshll.u32 %s251_s12, 4  ;;  %s15_s13 = int_to_ptr.vmem [resolvable:$true] %s14_s13 }
   0x2   :  { %s237_s14 = scalar_lea.vmem %s15_s13, 768  ;;  %p242_p1 = scmp.lt.s32.totalorder %s15_s13, %s15_s13 }
   0x3   :  { %p238_p0 = scmp.ne.s32.totalorder %s15_s13, %s237_s14  ;;  %p243_p2 = scmp.lt.s32.totalorder %s237_s14, %s237_s14 }
   0x5   :  { %p244_p3 = por %p243_p2, %p242_p1 }
   0x7   :  { %p245_p4 = pnand %p244_p3, %p238_p0 }
   0x9   :  { %248 = shalt.err (!%p245_p4)
}
   0xa   :  { %s252_s15 = smov 128   ;;  %s253_s16 = smov 8  }
   0xb   :  { %20 = dma.hbm_to_vmem [thread:$0]  %s318_s0, 768, %s15_s13, [#allocation3], %s252_s15, %s252_s15, %s253_s16  }
   0xc   :  { %249 = dma.done.wait [#allocation3], 768  }
   0xd   :  { %250 = vsyncadd [#allocation3], 4294966528  ;;  %v254_v0 = vmov 0.0   ;;  %vm255_vm0 = vmmov 0   ;;  %v226_v1 = vld [vmem:[%s319_s1 + $0x10] sm:$0xff]   ;;  %v227_v2 = vld [vmem:[%s319_s1 + $0x8] sm:$0xff]  }
   0xe   :  { %215 = vmatprep.subr.bf16.mxu1 %v254_v0  ;;  %197 = vmatprep.subr.bf16.mxu0 %v254_v0  ;;  %v228_v3 = vld [vmem:[%s319_s1] sm:$0xff]   ;;  %v31_v4 = vld [vmem:[#allocation2 + $0x10] sm:$0xff]  ;;  %v32_v5 = vld [vmem:[#allocation2 + $0x18] sm:$0xff]  ;;  %vm69_vm1 = vcmask 392192   ;;  %vm160_vm2 = vcmask 257024  }
   0xf   :  { %207 = vmatprep.mubr.msk.bf16.mxu1 %vm255_vm0, %v254_v0  ;;  %203 = vmatprep.mubr.msk.bf16.mxu0 %vm255_vm0, %v254_v0  ;;  %v29_v6 = vld [vmem:[#allocation2] sm:$0xff]  ;;  %v30_v7 = vld [vmem:[#allocation2 + $0x8] sm:$0xff]  ;;  %v36_v8 = vpack.c.bf16 %v32_v5, %v31_v4 }
  0x10   :  { %218 = vmatpush3.bf16.msra.mxu1 %v226_v1  ;;  %198 = vmatpush3.bf16.msra.mxu0 %v226_v1  ;;  %v35_v9 = vpack.c.bf16 %v30_v7, %v29_v6  ;;  %v33_v10 = vld [vmem:[#allocation2 + $0x20] sm:$0xff]  ;;  %v34_v11 = vld [vmem:[#allocation2 + $0x28] sm:$0xff] }
  0x11   :  { %216 = vmatprep.subr.bf16.mxu1 %v254_v0  ;;  %199 = vmatprep.subr.bf16.mxu0 %v254_v0  ;;  %v37_v12 = vpack.c.bf16 %v34_v11, %v33_v10  ;;  %v172_v13 = vld [vmem:[%s320_s2] ss:$0 sm:$0xff] }
  0x14   :  { %219 = vmatpush3.bf16.msra.mxu1 %v227_v2  ;;  %200 = vmatpush3.bf16.msra.mxu0 %v227_v2 }
  0x15   :  { %217 = vmatprep.subr.bf16.mxu1 %v254_v0  ;;  %201 = vmatprep.subr.bf16.mxu0 %v254_v0 }
  0x18   :  { %220 = vmatpush3.bf16.msra.mxu1 %v228_v3  ;;  %202 = vmatpush3.bf16.msra.mxu0 %v228_v3 }
  0x1b   :  { %208 = vmatmul.mubr.msk.bf16.vlgmr.msra.gmra.mxu1 %vm69_vm1, %v36_v8  ;;  %204 = vmatmul.mubr.msk.bf16.vlgmr.msra.gmra.mxu0 %vm69_vm1, %v35_v9 }
  0x1c   :  { %211 = vmatprep.mubr.msk.bf16.mxu1 %vm255_vm0, %v254_v0 }
  0x23   :  { %212 = vmatmul.mubr.msk.bf16.gmra.mxu1 %vm69_vm1, %v37_v12 }
  0xdb   :  { %v121_v14 = vpop.f32.mrf.mxu1  ;;  %v113_v15 = vpop.f32.mrf.mxu0 }
  0xdc   :  { %v122_v16 = vadd.f32 %v172_v13, %v121_v14  ;;  %v114_v17 = vadd.f32 %v172_v13, %v113_v15 }
  0xdd   :  { %v209_v18 = vpop.f32.mrf.mxu1  ;;  %v205_v19 = vpop.f32.mrf.mxu0 }
  0xde   :  { %v187_v20 = vpack.c.bf16 %v122_v16, %v122_v16  ;;  %v185_v21 = vpack.c.bf16 %v114_v17, %v114_v17 }
  0xdf   :  { %v124_v22 = vpop.f32.mrf.mxu1  ;;  %v116_v23 = vpop.f32.mrf.mxu0 }
  0xe0   :  { %163 = vst.msk [vmem:[%s321_s3 + $0x8] sm:$0xf] %vm160_vm2, %v187_v20  ;;  %161 = vst.msk [vmem:[%s321_s3] sm:$0xf] %vm160_vm2, %v185_v21  ;;  %v125_v24 = vadd.f32 %v172_v13, %v124_v22  ;;  %v117_v25 = vadd.f32 %v172_v13, %v116_v23 }
  0xe1   :  { %v210_v26 = vpop.f32.mrf.mxu1  ;;  %v206_v27 = vpop.f32.mrf.mxu0 }
  0xe2   :  { %v188_v28 = vpack.c.bf16 %v125_v24, %v125_v24  ;;  %v186_v29 = vpack.c.bf16 %v117_v25, %v117_v25 }
  0xe3   :  { %v129_v30 = vpop.f32.mrf.mxu1 }
  0xe4   :  { %164 = vst.msk [vmem:[%s321_s3 + $0xc] sm:$0xf] %vm160_vm2, %v188_v28  ;;  %162 = vst.msk [vmem:[%s321_s3 + $0x4] sm:$0xf] %vm160_vm2, %v186_v29  ;;  %v130_v31 = vadd.f32 %v172_v13, %v129_v30 }
  0xe5   :  { %v213_v32 = vpop.f32.mrf.mxu1 }
  0xe6   :  { %v189_v33 = vpack.c.bf16 %v130_v31, %v130_v31 }
  0xe7   :  { %v132_v34 = vpop.f32.mrf.mxu1 }
  0xe8   :  { %165 = vst.msk [vmem:[%s321_s3 + $0x10] sm:$0xf] %vm160_vm2, %v189_v33  ;;  %v133_v35 = vadd.f32 %v172_v13, %v132_v34 }
  0xe9   :  { %v214_v36 = vpop.f32.mrf.mxu1 }
  0xea   :  { %v190_v37 = vpack.c.bf16 %v133_v35, %v133_v35 }
  0xec   :  { %166 = vst.msk [vmem:[%s321_s3 + $0x14] sm:$0xf] %vm160_vm2, %v190_v37 }
  0xed   :  { %171 = vsyncpa [#allocation3], 1 }

</bundles_post_ra>
